<compile_context>
chip_gen: v6e
topology: v6e:2x2x1
jax: 0.10.0
libtpu: 0.0.40
codegen_flags: <defaults>
</compile_context>

<pallas_src>
import functools

import jax
import jax.numpy as jnp
from jax.experimental import pallas as pl
from jax.experimental.pallas import tpu as pltpu

_NEG = -1e30  # class-padding logit; exp(shifted) underflows to exactly 0


def _round_up(x, m):
    return ((x + m - 1) // m) * m


def _f1_loss_kernel(logits_ref, target_ref, out_ref, tp_ref, sp_ref, cnt_ref, *,
                    n_true, n_classes, epsilon, beta, block_n):
    # logits_ref: (block_n, C_pad) VMEM (any float dtype)
    # target_ref: (block_n, 1)     VMEM int32
    # out_ref:    (1, 1)           SMEM float32 scalar loss
    # tp_ref/sp_ref/cnt_ref: (1, C_pad) VMEM f32 accumulators (persist across grid)
    pid = pl.program_id(0)

    @pl.when(pid == 0)
    def _init():
        tp_ref[...] = jnp.zeros_like(tp_ref)
        sp_ref[...] = jnp.zeros_like(sp_ref)
        cnt_ref[...] = jnp.zeros_like(cnt_ref)

    logits = logits_ref[...].astype(jnp.float32)            # (TN, Cp)
    tgt = target_ref[...]                                   # (TN, 1) int32
    tn, c_pad = logits.shape

    # Mask batch-padding rows (global row index >= true N).
    row_idx = pid * block_n + jax.lax.broadcasted_iota(jnp.int32, (tn, 1), 0)
    row_mask = (row_idx < n_true).astype(jnp.float32)        # (TN, 1)

    # Numerically stable softmax; padded class columns hold _NEG -> prob == 0.
    m = jnp.max(logits, axis=1, keepdims=True)               # (TN, 1)
    ex = jnp.exp(logits - m)                                  # (TN, Cp)  (EUP)
    denom = jnp.sum(ex, axis=1, keepdims=True)                # (TN, 1)
    probs = (ex / denom) * row_mask                           # (TN, Cp)

    cls_idx = jax.lax.broadcasted_iota(jnp.int32, (tn, c_pad), 1)
    onehot = jnp.where(cls_idx == tgt, row_mask, 0.0)         # (TN, Cp), row-masked

    # Per-class partial sums over this batch tile (sublane reduce -> (1, Cp)).
    tp_ref[...] += jnp.sum(probs * onehot, axis=0, keepdims=True)
    sp_ref[...] += jnp.sum(probs, axis=0, keepdims=True)
    cnt_ref[...] += jnp.sum(onehot, axis=0, keepdims=True)

    @pl.when(pid == pl.num_programs(0) - 1)
    def _finalize():
        tp = tp_ref[...]
        fp = sp_ref[...] - tp          # sum_n probas*(1 - onehot)
        fn = cnt_ref[...] - tp         # sum_n (1 - probas)*onehot
        precision = tp / (tp + fp + epsilon)
        recall = tp / (tp + fn + epsilon)
        b2 = beta * beta
        f1 = (1.0 + b2) * (precision * recall) / (b2 * precision + recall + epsilon)
        # Mean over the real classes only (padded lanes contribute f1 == 0 anyway,
        # but the divisor must be the true class count).
        cmask = (jax.lax.broadcasted_iota(jnp.int32, f1.shape, 1) < n_classes
                 ).astype(jnp.float32)
        out_ref[0, 0] = 1.0 - jnp.sum(f1 * cmask) / float(n_classes)


def f1_loss_pallas(logits, targets, num_classes=None, epsilon=1e-7, beta=1.0,
                   block_n=512):
    """F1Loss forward. logits: (N, C) float, targets: (N,) int class indices."""
    n, c = logits.shape
    if num_classes is None:
        num_classes = c
    assert c == num_classes, "logits last dim must equal num_classes"

    # Lane-dense class padding and sublane-aligned batch tiling.
    c_pad = _round_up(max(c, 128), 128)
    block_n = max(8, min(_round_up(block_n, 8), _round_up(n, 8)))
    n_pad = _round_up(n, block_n)
    grid = (n_pad // block_n,)

    # Pad: padded class columns / padded rows get _NEG logits (softmax-safe);
    # padded targets are 0 and are masked out inside the kernel by the row mask.
    logits_p = jnp.full((n_pad, c_pad), _NEG, dtype=logits.dtype)
    logits_p = logits_p.at[:n, :c].set(logits)
    targets_p = jnp.zeros((n_pad, 1), dtype=jnp.int32).at[:n, 0].set(
        targets.reshape(-1).astype(jnp.int32))

    kernel = functools.partial(
        _f1_loss_kernel,
        n_true=int(n), n_classes=int(num_classes),
        epsilon=float(epsilon), beta=float(beta), block_n=int(block_n))

    out = pl.pallas_call(
        kernel,
        out_shape=jax.ShapeDtypeStruct((1, 1), jnp.float32),
        grid=grid,
        in_specs=[
            pl.BlockSpec((block_n, c_pad), lambda i: (i, 0)),   # logits tile
            pl.BlockSpec((block_n, 1), lambda i: (i, 0)),       # targets tile
        ],
        out_specs=pl.BlockSpec((1, 1), lambda i: (0, 0), memory_space=pltpu.SMEM),
        scratch_shapes=[
            pltpu.VMEM((1, c_pad), jnp.float32),   # tp accumulator
            pltpu.VMEM((1, c_pad), jnp.float32),   # sum(probas) accumulator
            pltpu.VMEM((1, c_pad), jnp.float32),   # target-count accumulator
        ],
        compiler_params=pltpu.CompilerParams(
            dimension_semantics=("arbitrary",)),   # batch axis is a reduction
    )(logits_p, targets_p)
    return out[0, 0]


def f1_loss_ref(logits, targets, num_classes, epsilon=1e-7, beta=1.0):
    """Pure-JAX reference mirroring the PyTorch F1Loss module."""
    probas = jax.nn.softmax(logits.astype(jnp.float32), axis=1)
    onehot = jax.nn.one_hot(targets, num_classes, dtype=jnp.float32)
    tp = jnp.sum(probas * onehot, axis=0)
    fp = jnp.sum(probas * (1.0 - onehot), axis=0)
    fn = jnp.sum((1.0 - probas) * onehot, axis=0)
    precision = tp / (tp + fp + epsilon)
    recall = tp / (tp + fn + epsilon)
    b2 = beta * beta
    f1 = (1.0 + b2) * (precision * recall) / (b2 * precision + recall + epsilon)
    return 1.0 - jnp.mean(f1)


if __name__ == "__main__":
    key = jax.random.PRNGKey(0)
    k1, k2 = jax.random.split(key)

    N, C = 20, 8  # batch=20 (not a multiple of the tile), num_classes=8
    logits = jax.random.normal(k1, (N, C), dtype=jnp.float32)
    targets = jax.random.randint(k2, (N,), 0, C, dtype=jnp.int32)

    ref = f1_loss_ref(logits, targets, C)

    # Single-tile path.
    out1 = jax.block_until_ready(f1_loss_pallas(logits, targets, num_classes=C))
    assert jnp.allclose(out1, ref, rtol=1e-4, atol=1e-4), (out1, ref)

    # Multi-step grid path (exercises accumulator + padded-row masking).
    out2 = jax.block_until_ready(
        f1_loss_pallas(logits, targets, num_classes=C, block_n=8))
    assert jnp.allclose(out2, ref, rtol=1e-4, atol=1e-4), (out2, ref)

    print("KERNEL_OK")
</pallas_src>

<mosaic_0001>
module attributes {stable_mosaic.version = 11 : i64} {
  func.func @_f1_loss_kernel(%arg0: i32, %arg1: memref<24x128xf32, #tpu.memory_space<vmem>>, %arg2: memref<24x1xi32, #tpu.memory_space<vmem>>, %arg3: memref<1x1xf32, #tpu.memory_space<smem>>, %arg4: memref<1x128xf32, #tpu.memory_space<vmem>>, %arg5: memref<1x128xf32, #tpu.memory_space<vmem>>, %arg6: memref<1x128xf32, #tpu.memory_space<vmem>>) attributes {dimension_semantics = [#tpu.dimension_semantics<arbitrary>], iteration_bounds = array<i64: 1>, scalar_prefetch = 0 : i64, scratch_operands = 3 : i64, tpu.core_type = #tpu.core_type<tc>, window_params = [{transform_indices = @transform_0, window_bounds = array<i64: 24, 128>}, {transform_indices = @transform_1, window_bounds = array<i64: 24, 1>}, {transform_indices = @transform_2, window_bounds = array<i64: 1, 1>}]} {
    %c0_i32 = arith.constant 0 : i32
    %0 = arith.cmpi eq, %arg0, %c0_i32 : i32
    %1 = arith.extui %0 : i1 to i32
    %c0_i32_0 = arith.constant 0 : i32
    %2 = arith.cmpi ne, %1, %c0_i32_0 : i32
    scf.if %2 {
      %cst_23 = arith.constant 0.000000e+00 : f32
      %50 = vector.broadcast %cst_23 : f32 to vector<1x128xf32>
      %c0_24 = arith.constant 0 : index
      %c0_25 = arith.constant 0 : index
      %51 = vector.load %arg4[%c0_24, %c0_25] : memref<1x128xf32, #tpu.memory_space<vmem>>, vector<1x128xf32>
      tpu.vector_store %arg4[%c0_24, %c0_25], %50 {strides = array<i32>} : memref<1x128xf32, #tpu.memory_space<vmem>>, vector<1x128xf32>,
      %cst_26 = arith.constant 0.000000e+00 : f32
      %52 = vector.broadcast %cst_26 : f32 to vector<1x128xf32>
      %c0_27 = arith.constant 0 : index
      %c0_28 = arith.constant 0 : index
      %53 = vector.load %arg5[%c0_27, %c0_28] : memref<1x128xf32, #tpu.memory_space<vmem>>, vector<1x128xf32>
      tpu.vector_store %arg5[%c0_27, %c0_28], %52 {strides = array<i32>} : memref<1x128xf32, #tpu.memory_space<vmem>>, vector<1x128xf32>,
      %cst_29 = arith.constant 0.000000e+00 : f32
      %54 = vector.broadcast %cst_29 : f32 to vector<1x128xf32>
      %c0_30 = arith.constant 0 : index
      %c0_31 = arith.constant 0 : index
      %55 = vector.load %arg6[%c0_30, %c0_31] : memref<1x128xf32, #tpu.memory_space<vmem>>, vector<1x128xf32>
      tpu.vector_store %arg6[%c0_30, %c0_31], %54 {strides = array<i32>} : memref<1x128xf32, #tpu.memory_space<vmem>>, vector<1x128xf32>,
    } else {
    }
    %c0 = arith.constant 0 : index
    %c0_1 = arith.constant 0 : index
    %3 = vector.load %arg1[%c0, %c0_1] : memref<24x128xf32, #tpu.memory_space<vmem>>, vector<24x128xf32>
    %c0_2 = arith.constant 0 : index
    %c0_3 = arith.constant 0 : index
    %4 = vector.load %arg2[%c0_2, %c0_3] : memref<24x1xi32, #tpu.memory_space<vmem>>, vector<24x1xi32>
    %c24_i32 = arith.constant 24 : i32
    %5 = arith.muli %arg0, %c24_i32 : i32
    %6 = tpu.iota {dimensions = array<i32: 0>} : vector<24x1xi32>
    %7 = vector.broadcast %5 : i32 to vector<24x1xi32>
    %8 = arith.addi %7, %6 : vector<24x1xi32>
    %c20_i32 = arith.constant 20 : i32
    %9 = vector.broadcast %c20_i32 : i32 to vector<24x1xi32>
    %10 = arith.cmpi slt, %8, %9 : vector<24x1xi32>
    %11 = arith.extui %10 : vector<24x1xi1> to vector<24x1xi32>
    %12 = arith.sitofp %11 : vector<24x1xi32> to vector<24x1xf32>
    %cst = arith.constant dense<0xFF800000> : vector<24xf32>
    %13 = vector.multi_reduction <maximumf>, %3, %cst [1] : vector<24x128xf32> to vector<24xf32>
    %14 = vector.shape_cast %13 : vector<24xf32> to vector<24x1xf32>
    %15 = vector.broadcast %14 : vector<24x1xf32> to vector<24x128xf32>
    %16 = arith.subf %3, %15 : vector<24x128xf32>
    %17 = math.exp %16 : vector<24x128xf32>
    %cst_4 = arith.constant dense<0.000000e+00> : vector<24xf32>
    %18 = vector.multi_reduction <add>, %17, %cst_4 [1] : vector<24x128xf32> to vector<24xf32>
    %19 = vector.shape_cast %18 : vector<24xf32> to vector<24x1xf32>
    %20 = vector.broadcast %19 : vector<24x1xf32> to vector<24x128xf32>
    %21 = arith.divf %17, %20 : vector<24x128xf32>
    %22 = vector.broadcast %12 : vector<24x1xf32> to vector<24x128xf32>
    %23 = arith.mulf %21, %22 : vector<24x128xf32>
    %24 = tpu.iota {dimensions = array<i32: 1>} : vector<24x128xi32>
    %25 = vector.broadcast %4 : vector<24x1xi32> to vector<24x128xi32>
    %26 = arith.cmpi eq, %24, %25 : vector<24x128xi32>
    %cst_5 = arith.constant 0.000000e+00 : f32
    %27 = vector.shape_cast %12 : vector<24x1xf32> to vector<24x1xf32>
    %28 = vector.broadcast %27 : vector<24x1xf32> to vector<24x128xf32>
    %29 = vector.broadcast %cst_5 : f32 to vector<24x128xf32>
    %30 = arith.select %26, %28, %29 : vector<24x128xi1>, vector<24x128xf32>
    %c0_6 = arith.constant 0 : index
    %c0_7 = arith.constant 0 : index
    %31 = vector.load %arg4[%c0_6, %c0_7] : memref<1x128xf32, #tpu.memory_space<vmem>>, vector<1x128xf32>
    %32 = arith.mulf %23, %30 : vector<24x128xf32>
    %cst_8 = arith.constant dense<0.000000e+00> : vector<128xf32>
    %33 = vector.multi_reduction <add>, %32, %cst_8 [0] : vector<24x128xf32> to vector<128xf32>
    %34 = vector.shape_cast %33 : vector<128xf32> to vector<1x128xf32>
    %35 = arith.addf %31, %34 : vector<1x128xf32>
    %c0_9 = arith.constant 0 : index
    %c0_10 = arith.constant 0 : index
    %36 = vector.load %arg4[%c0_9, %c0_10] : memref<1x128xf32, #tpu.memory_space<vmem>>, vector<1x128xf32>
    tpu.vector_store %arg4[%c0_9, %c0_10], %35 {strides = array<i32>} : memref<1x128xf32, #tpu.memory_space<vmem>>, vector<1x128xf32>,
    %c0_11 = arith.constant 0 : index
    %c0_12 = arith.constant 0 : index
    %37 = vector.load %arg5[%c0_11, %c0_12] : memref<1x128xf32, #tpu.memory_space<vmem>>, vector<1x128xf32>
    %cst_13 = arith.constant dense<0.000000e+00> : vector<128xf32>
    %38 = vector.multi_reduction <add>, %23, %cst_13 [0] : vector<24x128xf32> to vector<128xf32>
    %39 = vector.shape_cast %38 : vector<128xf32> to vector<1x128xf32>
    %40 = arith.addf %37, %39 : vector<1x128xf32>
    %c0_14 = arith.constant 0 : index
    %c0_15 = arith.constant 0 : index
    %41 = vector.load %arg5[%c0_14, %c0_15] : memref<1x128xf32, #tpu.memory_space<vmem>>, vector<1x128xf32>
    tpu.vector_store %arg5[%c0_14, %c0_15], %40 {strides = array<i32>} : memref<1x128xf32, #tpu.memory_space<vmem>>, vector<1x128xf32>,
    %c0_16 = arith.constant 0 : index
    %c0_17 = arith.constant 0 : index
    %42 = vector.load %arg6[%c0_16, %c0_17] : memref<1x128xf32, #tpu.memory_space<vmem>>, vector<1x128xf32>
    %cst_18 = arith.constant dense<0.000000e+00> : vector<128xf32>
    %43 = vector.multi_reduction <add>, %30, %cst_18 [0] : vector<24x128xf32> to vector<128xf32>
    %44 = vector.shape_cast %43 : vector<128xf32> to vector<1x128xf32>
    %45 = arith.addf %42, %44 : vector<1x128xf32>
    %c0_19 = arith.constant 0 : index
    %c0_20 = arith.constant 0 : index
    %46 = vector.load %arg6[%c0_19, %c0_20] : memref<1x128xf32, #tpu.memory_space<vmem>>, vector<1x128xf32>
    tpu.vector_store %arg6[%c0_19, %c0_20], %45 {strides = array<i32>} : memref<1x128xf32, #tpu.memory_space<vmem>>, vector<1x128xf32>,
    %c0_i32_21 = arith.constant 0 : i32
    %47 = arith.cmpi eq, %arg0, %c0_i32_21 : i32
    %48 = arith.extui %47 : i1 to i32
    %c0_i32_22 = arith.constant 0 : i32
    %49 = arith.cmpi ne, %48, %c0_i32_22 : i32
    scf.if %49 {
      %c0_23 = arith.constant 0 : index
      %c0_24 = arith.constant 0 : index
      %50 = vector.load %arg4[%c0_23, %c0_24] : memref<1x128xf32, #tpu.memory_space<vmem>>, vector<1x128xf32>
      %c0_25 = arith.constant 0 : index
      %c0_26 = arith.constant 0 : index
      %51 = vector.load %arg5[%c0_25, %c0_26] : memref<1x128xf32, #tpu.memory_space<vmem>>, vector<1x128xf32>
      %52 = arith.subf %51, %50 : vector<1x128xf32>
      %c0_27 = arith.constant 0 : index
      %c0_28 = arith.constant 0 : index
      %53 = vector.load %arg6[%c0_27, %c0_28] : memref<1x128xf32, #tpu.memory_space<vmem>>, vector<1x128xf32>
      %54 = arith.subf %53, %50 : vector<1x128xf32>
      %55 = arith.addf %50, %52 : vector<1x128xf32>
      %cst_29 = arith.constant 1.000000e-07 : f32
      %56 = vector.broadcast %cst_29 : f32 to vector<1x128xf32>
      %57 = arith.addf %55, %56 : vector<1x128xf32>
      %58 = arith.divf %50, %57 : vector<1x128xf32>
      %59 = arith.addf %50, %54 : vector<1x128xf32>
      %cst_30 = arith.constant 1.000000e-07 : f32
      %60 = vector.broadcast %cst_30 : f32 to vector<1x128xf32>
      %61 = arith.addf %59, %60 : vector<1x128xf32>
      %62 = arith.divf %50, %61 : vector<1x128xf32>
      %63 = arith.mulf %58, %62 : vector<1x128xf32>
      %cst_31 = arith.constant 2.000000e+00 : f32
      %64 = vector.broadcast %cst_31 : f32 to vector<1x128xf32>
      %65 = arith.mulf %64, %63 : vector<1x128xf32>
      %cst_32 = arith.constant 1.000000e+00 : f32
      %66 = vector.broadcast %cst_32 : f32 to vector<1x128xf32>
      %67 = arith.mulf %66, %58 : vector<1x128xf32>
      %68 = arith.addf %67, %62 : vector<1x128xf32>
      %cst_33 = arith.constant 1.000000e-07 : f32
      %69 = vector.broadcast %cst_33 : f32 to vector<1x128xf32>
      %70 = arith.addf %68, %69 : vector<1x128xf32>
      %71 = arith.divf %65, %70 : vector<1x128xf32>
      %72 = tpu.iota {dimensions = array<i32: 1>} : vector<1x128xi32>
      %c8_i32 = arith.constant 8 : i32
      %73 = vector.broadcast %c8_i32 : i32 to vector<1x128xi32>
      %74 = arith.cmpi slt, %72, %73 : vector<1x128xi32>
      %75 = arith.extui %74 : vector<1x128xi1> to vector<1x128xi32>
      %76 = arith.sitofp %75 : vector<1x128xi32> to vector<1x128xf32>
      %77 = arith.mulf %71, %76 : vector<1x128xf32>
      %78 = vector.shape_cast %77 : vector<1x128xf32> to vector<1x1x128xf32>
      %cst_34 = arith.constant dense<0.000000e+00> : vector<1xf32>
      %79 = vector.multi_reduction <add>, %78, %cst_34 [1, 2] : vector<1x1x128xf32> to vector<1xf32>
      %80 = vector.shape_cast %79 : vector<1xf32> to vector<1x1x1xf32>
      %81 = vector.extract %80[0, 0, 0] : f32 from vector<1x1x1xf32>
      %cst_35 = arith.constant 8.000000e+00 : f32
      %82 = arith.divf %81, %cst_35 : f32
      %cst_36 = arith.constant 1.000000e+00 : f32
      %83 = arith.subf %cst_36, %82 : f32
      %c0_37 = arith.constant 0 : index
      %c0_38 = arith.constant 0 : index
      %84 = memref.load %arg3[%c0_37, %c0_38] : memref<1x1xf32, #tpu.memory_space<smem>>
      memref.store %83, %arg3[%c0_37, %c0_38] : memref<1x1xf32, #tpu.memory_space<smem>>
    } else {
    }
    return
  }
  func.func @transform_0(%arg0: i32) -> (i32, i32) {
    %c0_i32 = arith.constant 0 : i32
    %c0_i32_0 = arith.constant 0 : i32
    return %arg0, %c0_i32 : i32, i32
  }
  func.func @transform_1(%arg0: i32) -> (i32, i32) {
    %c0_i32 = arith.constant 0 : i32
    %c0_i32_0 = arith.constant 0 : i32
    return %arg0, %c0_i32 : i32, i32
  }
  func.func @transform_2(%arg0: i32) -> (i32, i32) {
    %c0_i32 = arith.constant 0 : i32
    %c0_i32_0 = arith.constant 0 : i32
    %c0_i32_1 = arith.constant 0 : i32
    return %c0_i32, %c0_i32_0 : i32, i32
  }
}

</mosaic_0001>

<bundles_post_ra>
// kernel: tpu_custom_call.1
= control target key start
LH: loop header
LB: loop body
LE: loop exit
PB: predicated region body
PF: predicated region fallthrough
CT: control target
= control target key end

     0   :  { %s271_s0 = inlined_call_operand.vmem [shape: f32[24,128], index: 0, kind: input, shape index: {}]   ;;  %s272_s1 = inlined_call_operand.vmem [shape: s32[24,1], index: 1, kind: input, shape index: {}]   ;;  %s273_s2 = inlined_call_operand.hbm [shape: f32[1,1], index: 2, kind: output, shape index: {}]  }
   0x1   :  { %v19_v0 = vld [vmem:[%s271_s0] sm:$0xff]  ;;  %v21_v1 = vld [vmem:[%s271_s0 + $0x10] sm:$0xff] }
   0x2   :  { %43 = vmax.xlane.f32.xlu0 %v19_v0  ;;  %47 = vmax.xlane.f32.xlu1 %v21_v1 }
   0x3   :  { %7 = vsyncpa [#allocation6], 0  ;;  %v20_v2 = vld [vmem:[%s271_s0 + $0x8] sm:$0xff]  ;;  %v219_v3 = vmov 0   ;;  %v220_v13 = vmov 0.0   ;;  %v22_v14 = vld [vmem:[%s272_s1] sm:$0xff]  ;;  %v26_v21 = vlaneseq }
   0x4   :  { %190 = vset.pattern.permute.xlu1 %v219_v3  ;;  %189 = vset.pattern.permute.xlu0 %v219_v3  ;;  %v23_v12 = vld [vmem:[%s272_s1 + $0x8] sm:$0xff]  ;;  %16 = vst [vmem:[#allocation2] sm:$0x1] %v220_v13  ;;  %17 = vst [vmem:[#allocation3] sm:$0x1] %v220_v13  ;;  %v24_v19 = vld [vmem:[%s272_s1 + $0x10] sm:$0xff] }
   0x5   :  { %18 = vst [vmem:[#allocation4] sm:$0x1] %v220_v13  ;;  %v27_v23 = vshrl.u32 %v26_v21, 7  ;;  %v258_v27 = vand.u32 127, %v26_v21  ;;  %vm152_vm5 = vcmask 1040384   ;;  %s221_s22 = smov [#allocation5]  }
   0x6   :  { %45 = vmax.xlane.f32.xlu0 %v20_v2 }
   0x7   :  { %v29_v26 = vadd.s32 16, %v27_v23  ;;  %vm148_vm4 = vcmp.lt.s32.totalorder %v258_v27, 8 }
   0x9   :  { %vm36_vm1 = vcmp.lt.s32.totalorder %v29_v26, 20 }
   0xa   :  { %v182_v30 = vsel %vm36_vm1, 1.0, %v220_v13 }
   0xb   :  { %v104_v3 = vld [vmem:[#allocation3] sm:$0x1] }
   0xc   :  { %v115_v51 = vld [vmem:[#allocation4] sm:$0x1] }
  0x8b   :  { %v44_v4 = vpop.xlane.xlu0 %43  ;;  %v48_v15 = vpop.xlane.xlu1 %47 }
  0x8c   :  { %v49_v5 = vsub.f32 %v19_v0, %v44_v4  ;;  %v51_v16 = vsub.f32 %v21_v1, %v48_v15 }
  0x8e   :  { %v52_v6 = vmul.f32 1.442695, %v49_v5  ;;  %v56_v17 = vmul.f32 1.442695, %v51_v16 }
  0x8f   :  { %v46_v7 = vpop.xlane.xlu0 %45 }
  0x90   :  { %191 = vpow2.f32 %v52_v6  ;;  %v50_v8 = vsub.f32 %v20_v2, %v46_v7  ;;  %v90_v6 = vld [vmem:[#allocation2] sm:$0x1] }
  0x92   :  { %v54_v9 = vmul.f32 1.442695, %v50_v8 }
  0x94   :  { %193 = vpow2.f32 %v54_v9 }
  0x95   :  { %195 = vpow2.f32 %v56_v17 }
  0x9d   :  { %v192_v10 = vpop.eup %191 }
  0x9e   :  { %58 = vadd.xlane.f32.xlu1 %v192_v10 }
  0xa1   :  { %v194_v11 = vpop.eup %193 }
  0xa2   :  { %60 = vadd.xlane.f32.xlu0 %v194_v11  ;;  %v196_v18 = vpop.eup %195 }
  0xaf   :  { %79 = vperm.xlu1 %190, %v23_v12  }
  0xb8   :  { %76 = vperm.xlu0 %189, %v22_v14  }
  0xd3   :  { %62 = vadd.xlane.f32.xlu1 %v196_v18 }
  0xe4   :  { %82 = vperm.xlu1 %190, %v24_v19  }
 0x127   :  { %v59_v20 = vpop.xlane.xlu1 %58 }
 0x12b   :  { %v61_v22 = vpop.xlane.xlu0 %60  ;;  %v80_v24 = vpop.permute.xlu1 %79 }
 0x12c   :  { %197 = vrcp.f32 %v61_v22  ;;  %vm85_vm2 = vcmp.eq.s32.totalorder %v258_v27, %v80_v24 }
 0x12d   :  { %199 = vrcp.f32 %v59_v20  ;;  %v88_v31 = vsel %vm85_vm2, 1.0, %v220_v13 }
 0x133   :  { %v77_v25 = vpop.permute.xlu0 %76 }
 0x134   :  { %vm84_vm0 = vcmp.eq.s32.totalorder %v258_v27, %v77_v25 }
 0x135   :  { %v87_v29 = vsel %vm84_vm0, 1.0, %v220_v13 }
 0x136   :  { %v116_v33 = vadd.f32 %v88_v31, %v87_v29 }
 0x139   :  { %v198_v36 = vpop.eup %197 }
 0x13a   :  { %v200_v38 = vpop.eup %199  ;;  %v67_v39 = vmul.f32 %v198_v36, %v194_v11 }
 0x13b   :  { %v65_v41 = vmul.f32 %v200_v38, %v192_v10 }
 0x13c   :  { %v92_v44 = vmul.f32 %v88_v31, %v67_v39 }
 0x13d   :  { %v105_v47 = vadd.f32 %v67_v39, %v65_v41  ;;  %v91_v48 = vmul.f32 %v87_v29, %v65_v41 }
 0x13f   :  { %v94_v52 = vadd.f32 %v92_v44, %v91_v48 }
 0x15c   :  { %v63_v28 = vpop.xlane.xlu1 %62 }
 0x15d   :  { %201 = vrcp.f32 %v63_v28 }
 0x160   :  { %v83_v32 = vpop.permute.xlu1 %82 }
 0x161   :  { %vm86_vm3 = vcmp.eq.s32.totalorder %v258_v27, %v83_v32 }
 0x162   :  { %v89_v34 = vsel %vm86_vm3, %v182_v30, 0.0 }
 0x163   :  { %v117_v35 = vadd.f32 %v116_v33, %v89_v34 }
 0x165   :  { %v118_v37 = vrot.slane %v117_v35, 4 }
 0x167   :  { %v119_v40 = vadd.f32 %v118_v37, %v117_v35 }
 0x169   :  { %v120_v42 = vrot.slane %v119_v40, 2 }
 0x16a   :  { %v202_v43 = vpop.eup %201 }
 0x16b   :  { %v69_v45 = vmul.f32 %v202_v43, %v196_v18  ;;  %v121_v46 = vadd.f32 %v120_v42, %v119_v40 }
 0x16d   :  { %v72_v49 = vmul.f32 %v182_v30, %v69_v45  ;;  %v122_v50 = vrot.slane %v121_v46, 1  ;;  %v183_v30 = vsel %vm148_vm4, 1.0, %v220_v13 }
 0x16f   :  { %v93_v53 = vmul.f32 %v89_v34, %v72_v49  ;;  %v106_v54 = vadd.f32 %v105_v47, %v72_v49  ;;  %v123_v55 = vadd.f32 %v122_v50, %v121_v46 }
 0x171   :  { %v95_v56 = vadd.f32 %v94_v52, %v93_v53  ;;  %v107_v57 = vrot.slane %v106_v54, 4  ;;  %v124_v58 = vadd.f32 %v123_v55, %v115_v51 }
 0x173   :  { %v96_v59 = vrot.slane %v95_v56, 4  ;;  %v108_v60 = vadd.f32 %v107_v57, %v106_v54  ;;  %125 = vst [vmem:[#allocation4] sm:$0x1] %v124_v58 }
 0x175   :  { %v97_v61 = vadd.f32 %v96_v59, %v95_v56  ;;  %v109_v62 = vrot.slane %v108_v60, 2 }
 0x177   :  { %v98_v63 = vrot.slane %v97_v61, 2  ;;  %v110_v0 = vadd.f32 %v109_v62, %v108_v60 }
 0x179   :  { %v99_v1 = vadd.f32 %v98_v63, %v97_v61  ;;  %v111_v2 = vrot.slane %v110_v0, 1 }
 0x17a   :  { %v132_v12 = vld [vmem:[#allocation4] sm:$0x1] }
 0x17b   :  { %v100_v4 = vrot.slane %v99_v1, 1  ;;  %v112_v5 = vadd.f32 %v111_v2, %v110_v0 }
 0x17d   :  { %v101_v7 = vadd.f32 %v100_v4, %v99_v1  ;;  %v113_v8 = vadd.f32 %v112_v5, %v104_v3 }
 0x17f   :  { %v102_v9 = vadd.f32 %v101_v7, %v90_v6  ;;  %114 = vst [vmem:[#allocation3] sm:$0x1] %v113_v8 }
 0x181   :  { %103 = vst [vmem:[#allocation2] sm:$0x1] %v102_v9 }
 0x186   :  { %v130_v11 = vld [vmem:[#allocation3] sm:$0x1] }
 0x188   :  { %v129_v10 = vld [vmem:[#allocation2] sm:$0x1] }
 0x189   :  { %v131_v14 = vsub.f32 %v130_v11, %v129_v10  ;;  %v133_v15 = vsub.f32 %v132_v12, %v129_v10 }
 0x18b   :  { %v134_v16 = vadd.f32 %v131_v14, %v129_v10  ;;  %v138_v17 = vadd.f32 %v133_v15, %v129_v10 }
 0x18d   :  { %v135_v18 = vadd.f32 1e-07, %v134_v16  ;;  %v139_v19 = vadd.f32 1e-07, %v138_v17 }
 0x18f   :  { %203 = vrcp.f32 %v135_v18 }
 0x190   :  { %205 = vrcp.f32 %v139_v19 }
 0x19c   :  { %v204_v20 = vpop.eup %203 }
 0x19d   :  { %v206_v21 = vpop.eup %205  ;;  %v137_v22 = vmul.f32 %v204_v20, %v129_v10 }
 0x19e   :  { %v141_v23 = vmul.f32 %v206_v21, %v129_v10 }
 0x1a0   :  { %v144_v24 = vadd.f32 %v141_v23, %v137_v22  ;;  %v142_v26 = vmul.f32 %v141_v23, %v137_v22 }
 0x1a2   :  { %v145_v25 = vadd.f32 1e-07, %v144_v24  ;;  %v143_v28 = vmul.f32 2.0, %v142_v26 }
 0x1a4   :  { %207 = vrcp.f32 %v145_v25 }
 0x1b1   :  { %v208_v29 = vpop.eup %207 }
 0x1b2   :  { %v147_v31 = vmul.f32 %v208_v29, %v143_v28 }
 0x1b4   :  { %v151_v32 = vmul.f32 %v183_v30, %v147_v31 }
 0x1b6   :  { %v153_v33 = vsel %vm152_vm5, %v151_v32, 0.0 }
 0x1b7   :  { %154 = vadd.xlane.f32.xlu1 %v153_v33 }
 0x240   :  { %v155_v34 = vpop.xlane.xlu1 %154 }
 0x241   :  { %v156_v35 = vrot.slane %v155_v34, 4 }
 0x243   :  { %v157_v36 = vadd.f32 %v156_v35, %v155_v34 }
 0x245   :  { %v158_v37 = vrot.slane %v157_v36, 2 }
 0x247   :  { %v159_v38 = vadd.f32 %v158_v37, %v157_v36 }
 0x249   :  { %v160_v39 = vrot.slane %v159_v38, 1 }
 0x24b   :  { %v161_v40 = vadd.f32 %v160_v39, %v159_v38 }
 0x24d   :  { %184 = vpush %v161_v40 }
 0x27e   :  { %s185_s1 = spop %184 }
 0x27f   :  { %s165_s20 = smul.f32 0.125, %s185_s1 }
 0x281   :  { %s166_s21 = ssub.f32 1.0, %s165_s20 }
 0x283   :  { %168 = sst [smem:[#allocation5]] %s166_s21 }
 0x284   :  { %176 = dma.smem_to_hbm %s221_s22, 16, %s273_s2, [#allocation6]  }
 0x285   :  { %217 = dma.done.wait [#allocation6], 16  }
 0x286   :  { %218 = vsyncadd [#allocation6], 4294967280 }
 0x287   :  { %180 = sfence }
 0x288   :  { %181 = vsyncpa [#allocation6], 1 }

</bundles_post_ra>
